<compile_context>
chip_gen: v7x
topology: tpu7x:2x2x1
jax: 0.10.0
libtpu: 0.0.40
codegen_flags: <defaults>
</compile_context>

<pallas_src>
import jax
import jax.numpy as jnp
from jax.experimental import pallas as pl
from jax.experimental.pallas import tpu as pltpu


# ----------------------------- Pallas kernel --------------------------------
def _make_rw_ce_kernel(s_true, tile_s):
    """Kernel factory closing over static spatial size (for padding mask)."""

    def kernel(x_ref, lab_ref, rw_ref, o_ref):
        x = x_ref[...].astype(jnp.float32)     # (N, C, T) logits tile
        rw = rw_ref[...].astype(jnp.float32)   # (N, C, T) random-walk weights
        lab = lab_ref[...]                     # (N, T)    int32 class labels
        n, c, t = x.shape

        # softmax over the channel axis (dim 1) == softmax_helper
        m = jnp.max(x, axis=1, keepdims=True)            # (N, 1, T)
        e = jnp.exp(x - m)                               # (N, C, T)
        denom = jnp.sum(e, axis=1, keepdims=True)        # (N, 1, T)
        inv = 1.0 / denom                                # one divide per pixel
        sm = e * inv                                     # (N, C, T)

        # CE term: select the label channel of the softmax via iota compare
        # (replaces the streamed f32 one-hot), then a single log per pixel.
        c_iota = jax.lax.broadcasted_iota(jnp.int32, (n, c, t), 1)
        onehot = (c_iota == lab[:, None, :]).astype(jnp.float32)
        sm_lab = jnp.sum(sm * onehot, axis=1)            # (N, T)
        ce_pix = jnp.log(sm_lab + 1e-15)                 # (N, T), keeps ref eps

        # mask out spatial padding (padded columns beyond the true S)
        col = (jax.lax.broadcasted_iota(jnp.int32, (n, t), 1)
               + pl.program_id(0) * tile_s)
        valid = (col < s_true).astype(jnp.float32)
        ce_sum = jnp.sum(ce_pix * valid)

        # RW term: padded rrwmap columns are zero, so no mask needed.
        rw_sum = jnp.sum(sm * rw)

        # emit per-tile partial sums into a lane-dense (1, 8, 128) output row:
        #   lane 0 -> ce partial sum, lane 1 -> rw partial sum, rest zero.
        lane = jax.lax.broadcasted_iota(jnp.int32, o_ref.shape, 2)
        o_ref[...] = (jnp.where(lane == 0, ce_sum, 0.0)
                      + jnp.where(lane == 1, rw_sum, 0.0))

    return kernel


def _choose_tile_s(n, c, s, x_itemsize):
    """Largest 128-multiple spatial tile whose double-buffered input streams
    stay well under the most conservative scoped-VMEM default (16 MiB)."""
    per_s_bytes = n * c * (x_itemsize + 4) + n * 4   # x + rrwmap + labels
    budget = 8 * 1024 * 1024
    t = budget // max(1, 2 * per_s_bytes)            # 2x for double-buffering
    t = max(128, min(1024, (t // 128) * 128))
    s_128 = max(128, ((s + 127) // 128) * 128)
    return min(t, s_128)


def _rw_equal_ce_loss_pallas(x_ncs, lab_ns, rw_ncs, s_true, tile_s):
    N, C, S_pad = x_ncs.shape
    num_tiles = S_pad // tile_s

    partials = pl.pallas_call(
        _make_rw_ce_kernel(s_true, tile_s),
        out_shape=jax.ShapeDtypeStruct((num_tiles, 8, 128), jnp.float32),
        grid=(num_tiles,),
        in_specs=[
            pl.BlockSpec((N, C, tile_s), lambda s: (0, 0, s)),   # logits
            pl.BlockSpec((N, tile_s), lambda s: (0, s)),         # int labels
            pl.BlockSpec((N, C, tile_s), lambda s: (0, 0, s)),   # rrwmap
        ],
        out_specs=pl.BlockSpec((1, 8, 128), lambda s: (s, 0, 0)),
        compiler_params=pltpu.CompilerParams(
            dimension_semantics=("parallel",),        # shards tiles over TCs (v7x)
            vmem_limit_bytes=32 * 1024 * 1024,
        ),
    )(x_ncs, lab_ns, rw_ncs)

    ce_sum = jnp.sum(partials[:, 0, 0])
    rw_sum = jnp.sum(partials[:, 0, 1])
    celoss = -(ce_sum / jnp.float32(N * s_true))          # mean over (N, H*W)
    rwloss = rw_sum / jnp.float32(N * C * s_true)         # mean over (N, C, H*W)
    return celoss + rwloss


# ------------------------- plain-JAX glue / prep -----------------------------
def _edt_2d(mask_hw):
    """Exact Euclidean distance from each pixel to the nearest zero (background)
    pixel of a 2-D binary mask. Separable exact formulation, O(HW*(H+W))."""
    H, W = mask_hw.shape
    is_bg = (mask_hw == 0)
    BIG = jnp.float32(1e12)

    # 1-D squared distance along each row to the nearest background column.
    j = jnp.arange(W, dtype=jnp.float32)
    dj2 = (j[:, None] - j[None, :]) ** 2                                  # (W, W)
    dcol2 = jnp.min(jnp.where(is_bg[:, None, :], dj2[None, :, :], BIG),
                    axis=2)                                               # (H, W)

    # combine across rows: d2[i, j] = min_{i'} (i - i')^2 + dcol2[i', j]
    i = jnp.arange(H, dtype=jnp.float32)
    di2 = (i[:, None] - i[None, :]) ** 2                                  # (H, H)
    d2 = jnp.min(di2[:, :, None] + dcol2[None, :, :], axis=1)             # (H, W)

    d = jnp.sqrt(jnp.minimum(d2, BIG))
    # no background pixels -> distance 0 (then rrwmap becomes 1 everywhere).
    return jnp.where(jnp.any(is_bg), d, 0.0)


def _rrwmap_from_onehot(y_onehot_nchw):
    """rrwmap[b,c] = -(dist / max(dist + 1e-15));  rrwmap[rrwmap == 0] = 1."""
    # TODO(synk): the scipy exact EDT (`dist`) has no Pallas equivalent; it is
    # computed here in plain JAX (separable exact form; a scan-based
    # Felzenszwalb pass would further reduce memory at very large H, W).
    N, C, H, W = y_onehot_nchw.shape
    flat = y_onehot_nchw.reshape(N * C, H, W)
    d = jax.vmap(_edt_2d)(flat)                                        # (N*C, H, W)
    mx = jnp.max(d + 1e-15, axis=(1, 2), keepdims=True)
    r = -(d / mx)
    r = jnp.where(r == 0.0, 1.0, r)
    return r.reshape(N, C, H, W).astype(jnp.float32)


def rw_equal_ce_loss(x, y_, e=None, tile_s=None):
    """x: (N, C, H, W) float logits; y_: (N, 1, H, W) int class labels.
    `e` (epoch) is accepted but unused, matching RWEqualCELoss.forward."""
    del e
    N, C, H, W = x.shape
    labels = y_[:, 0].astype(jnp.int32)                                # (N, H, W)
    y_onehot = (labels[:, None, :, :] ==
                jnp.arange(C, dtype=jnp.int32)[None, :, None, None]
                ).astype(jnp.float32)                                  # (N, C, H, W)
    rrwmap = _rrwmap_from_onehot(y_onehot)                             # (N, C, H, W)

    S = H * W
    x_ncs = x.reshape(N, C, S)                   # keep native dtype on the wire
    lab_ns = labels.reshape(N, S)
    rw_ncs = rrwmap.reshape(N, C, S)

    if tile_s is None:
        tile_s = _choose_tile_s(N, C, S, jnp.dtype(x.dtype).itemsize)
    s_pad = -(-S // tile_s) * tile_s
    if s_pad != S:
        pad = s_pad - S
        x_ncs = jnp.pad(x_ncs, ((0, 0), (0, 0), (0, pad)))
        lab_ns = jnp.pad(lab_ns, ((0, 0), (0, pad)))
        rw_ncs = jnp.pad(rw_ncs, ((0, 0), (0, 0), (0, pad)))   # zeros -> no RW contrib

    return _rw_equal_ce_loss_pallas(x_ncs, lab_ns, rw_ncs, S, tile_s)


# --------------------------------- main --------------------------------------
if __name__ == "__main__":
    N, C, H, W = 2, 4, 16, 16
    key = jax.random.PRNGKey(0)
    kx, ky = jax.random.split(key)
    x = jax.random.normal(kx, (N, C, H, W), dtype=jnp.float32)
    y_ = jax.random.randint(ky, (N, 1, H, W), 0, C)   # integer class labels
    e = jnp.zeros(())                                 # unused epoch argument

    loss = rw_equal_ce_loss(x, y_, e)
    jax.block_until_ready(loss)

    # internal consistency: forcing a small spatial tile exercises the
    # multi-step grid / cross-tile partial-sum path and must match.
    loss_tiled = rw_equal_ce_loss(x, y_, e, tile_s=128)
    jax.block_until_ready(loss_tiled)

    assert bool(jnp.isfinite(loss)), "loss is not finite"
    assert bool(jnp.allclose(loss, loss_tiled, rtol=1e-5, atol=1e-6)), \
        (float(loss), float(loss_tiled))

    print("KERNEL_OK")
</pallas_src>

<mosaic_0001>
module attributes {stable_mosaic.version = 11 : i64} {
  func.func @kernel(%arg0: i32, %arg1: memref<2x4x256xf32, #tpu.memory_space<vmem>>, %arg2: memref<2x256xi32, #tpu.memory_space<vmem>>, %arg3: memref<2x4x256xf32, #tpu.memory_space<vmem>>, %arg4: memref<1x8x128xf32, #tpu.memory_space<vmem>>) attributes {dimension_semantics = [#tpu.dimension_semantics<parallel>], iteration_bounds = array<i64: 1>, scalar_prefetch = 0 : i64, scratch_operands = 0 : i64, tpu.core_type = #tpu.core_type<tc>, window_params = [{transform_indices = @transform_0, window_bounds = array<i64: 2, 4, 256>}, {transform_indices = @transform_1, window_bounds = array<i64: 2, 256>}, {transform_indices = @transform_2, window_bounds = array<i64: 2, 4, 256>}, {transform_indices = @transform_3, window_bounds = array<i64: 1, 8, 128>}]} {
    %c0 = arith.constant 0 : index
    %c0_0 = arith.constant 0 : index
    %c0_1 = arith.constant 0 : index
    %0 = vector.load %arg1[%c0, %c0_0, %c0_1] : memref<2x4x256xf32, #tpu.memory_space<vmem>>, vector<2x4x256xf32>
    %c0_2 = arith.constant 0 : index
    %c0_3 = arith.constant 0 : index
    %c0_4 = arith.constant 0 : index
    %1 = vector.load %arg3[%c0_2, %c0_3, %c0_4] : memref<2x4x256xf32, #tpu.memory_space<vmem>>, vector<2x4x256xf32>
    %c0_5 = arith.constant 0 : index
    %c0_6 = arith.constant 0 : index
    %2 = vector.load %arg2[%c0_5, %c0_6] : memref<2x256xi32, #tpu.memory_space<vmem>>, vector<2x256xi32>
    %cst = arith.constant dense<0xFF800000> : vector<2x256xf32>
    %3 = vector.multi_reduction <maximumf>, %0, %cst [1] : vector<2x4x256xf32> to vector<2x256xf32>
    %4 = vector.shape_cast %3 : vector<2x256xf32> to vector<2x1x256xf32>
    %5 = vector.broadcast %4 : vector<2x1x256xf32> to vector<2x4x256xf32>
    %6 = arith.subf %0, %5 : vector<2x4x256xf32>
    %7 = math.exp %6 : vector<2x4x256xf32>
    %cst_7 = arith.constant dense<0.000000e+00> : vector<2x256xf32>
    %8 = vector.multi_reduction <add>, %7, %cst_7 [1] : vector<2x4x256xf32> to vector<2x256xf32>
    %9 = vector.shape_cast %8 : vector<2x256xf32> to vector<2x1x256xf32>
    %cst_8 = arith.constant 1.000000e+00 : f32
    %10 = vector.broadcast %cst_8 : f32 to vector<2x1x256xf32>
    %11 = arith.divf %10, %9 : vector<2x1x256xf32>
    %12 = vector.broadcast %11 : vector<2x1x256xf32> to vector<2x4x256xf32>
    %13 = arith.mulf %7, %12 : vector<2x4x256xf32>
    %14 = tpu.iota {dimensions = array<i32: 1>} : vector<2x4x256xi32>
    %15 = vector.shape_cast %2 : vector<2x256xi32> to vector<2x1x256xi32>
    %16 = vector.broadcast %15 : vector<2x1x256xi32> to vector<2x4x256xi32>
    %17 = arith.cmpi eq, %14, %16 : vector<2x4x256xi32>
    %18 = arith.extui %17 : vector<2x4x256xi1> to vector<2x4x256xi32>
    %19 = arith.sitofp %18 : vector<2x4x256xi32> to vector<2x4x256xf32>
    %20 = arith.mulf %13, %19 : vector<2x4x256xf32>
    %cst_9 = arith.constant dense<0.000000e+00> : vector<2x256xf32>
    %21 = vector.multi_reduction <add>, %20, %cst_9 [1] : vector<2x4x256xf32> to vector<2x256xf32>
    %cst_10 = arith.constant 1.000000e-15 : f32
    %22 = vector.broadcast %cst_10 : f32 to vector<2x256xf32>
    %23 = arith.addf %21, %22 : vector<2x256xf32>
    %24 = math.log %23 : vector<2x256xf32>
    %25 = tpu.iota {dimensions = array<i32: 1>} : vector<2x256xi32>
    %c256_i32 = arith.constant 256 : i32
    %26 = arith.muli %arg0, %c256_i32 : i32
    %27 = vector.broadcast %26 : i32 to vector<2x256xi32>
    %28 = arith.addi %25, %27 : vector<2x256xi32>
    %c256_i32_11 = arith.constant 256 : i32
    %29 = vector.broadcast %c256_i32_11 : i32 to vector<2x256xi32>
    %30 = arith.cmpi slt, %28, %29 : vector<2x256xi32>
    %31 = arith.extui %30 : vector<2x256xi1> to vector<2x256xi32>
    %32 = arith.sitofp %31 : vector<2x256xi32> to vector<2x256xf32>
    %33 = arith.mulf %24, %32 : vector<2x256xf32>
    %34 = vector.shape_cast %33 : vector<2x256xf32> to vector<1x2x256xf32>
    %cst_12 = arith.constant dense<0.000000e+00> : vector<1xf32>
    %35 = vector.multi_reduction <add>, %34, %cst_12 [1, 2] : vector<1x2x256xf32> to vector<1xf32>
    %36 = vector.shape_cast %35 : vector<1xf32> to vector<1x1x1xf32>
    %37 = vector.extract %36[0, 0, 0] : f32 from vector<1x1x1xf32>
    %38 = arith.mulf %13, %1 : vector<2x4x256xf32>
    %39 = vector.shape_cast %38 : vector<2x4x256xf32> to vector<1x2x4x256xf32>
    %cst_13 = arith.constant dense<0.000000e+00> : vector<1xf32>
    %40 = vector.multi_reduction <add>, %39, %cst_13 [1, 2, 3] : vector<1x2x4x256xf32> to vector<1xf32>
    %41 = vector.shape_cast %40 : vector<1xf32> to vector<1x1x1x1xf32>
    %42 = vector.extract %41[0, 0, 0, 0] : f32 from vector<1x1x1x1xf32>
    %43 = tpu.iota {dimensions = array<i32: 2>} : vector<1x8x128xi32>
    %c0_i32 = arith.constant 0 : i32
    %44 = vector.broadcast %c0_i32 : i32 to vector<1x8x128xi32>
    %45 = arith.cmpi eq, %43, %44 : vector<1x8x128xi32>
    %cst_14 = arith.constant 0.000000e+00 : f32
    %46 = vector.broadcast %37 : f32 to vector<1x8x128xf32>
    %47 = vector.broadcast %cst_14 : f32 to vector<1x8x128xf32>
    %48 = arith.select %45, %46, %47 : vector<1x8x128xi1>, vector<1x8x128xf32>
    %c1_i32 = arith.constant 1 : i32
    %49 = vector.broadcast %c1_i32 : i32 to vector<1x8x128xi32>
    %50 = arith.cmpi eq, %43, %49 : vector<1x8x128xi32>
    %cst_15 = arith.constant 0.000000e+00 : f32
    %51 = vector.broadcast %42 : f32 to vector<1x8x128xf32>
    %52 = vector.broadcast %cst_15 : f32 to vector<1x8x128xf32>
    %53 = arith.select %50, %51, %52 : vector<1x8x128xi1>, vector<1x8x128xf32>
    %54 = arith.addf %48, %53 : vector<1x8x128xf32>
    %c0_16 = arith.constant 0 : index
    %c0_17 = arith.constant 0 : index
    %c0_18 = arith.constant 0 : index
    %55 = vector.load %arg4[%c0_16, %c0_17, %c0_18] : memref<1x8x128xf32, #tpu.memory_space<vmem>>, vector<1x8x128xf32>
    tpu.vector_store %arg4[%c0_16, %c0_17, %c0_18], %54 {strides = array<i32>} : memref<1x8x128xf32, #tpu.memory_space<vmem>>, vector<1x8x128xf32>,
    return
  }
  func.func @transform_0(%arg0: i32) -> (i32, i32, i32) {
    %c0_i32 = arith.constant 0 : i32
    %c0_i32_0 = arith.constant 0 : i32
    %c0_i32_1 = arith.constant 0 : i32
    return %c0_i32, %c0_i32_0, %arg0 : i32, i32, i32
  }
  func.func @transform_1(%arg0: i32) -> (i32, i32) {
    %c0_i32 = arith.constant 0 : i32
    %c0_i32_0 = arith.constant 0 : i32
    return %c0_i32, %arg0 : i32, i32
  }
  func.func @transform_2(%arg0: i32) -> (i32, i32, i32) {
    %c0_i32 = arith.constant 0 : i32
    %c0_i32_0 = arith.constant 0 : i32
    %c0_i32_1 = arith.constant 0 : i32
    return %c0_i32, %c0_i32_0, %arg0 : i32, i32, i32
  }
  func.func @transform_3(%arg0: i32) -> (i32, i32, i32) {
    %c0_i32 = arith.constant 0 : i32
    %c0_i32_0 = arith.constant 0 : i32
    %c0_i32_1 = arith.constant 0 : i32
    return %arg0, %c0_i32, %c0_i32_0 : i32, i32, i32
  }
}

</mosaic_0001>

<bundles_post_ra>
// kernel: tpu_custom_call.1
= control target key start
LH: loop header
LB: loop body
LE: loop exit
PB: predicated region body
PF: predicated region fallthrough
CT: control target
= control target key end

     0   :  { %8 = vsyncpa [#allocation3], 0  ;;  %s587_s0 = inlined_call_operand.hbm [shape: f32[2,4,256], index: 0, kind: input, shape index: {}]   ;;  %s588_s1 = inlined_call_operand.hbm [shape: s32[2,256], index: 1, kind: input, shape index: {}]   ;;  %s589_s2 = inlined_call_operand.hbm [shape: f32[2,4,256], index: 2, kind: input, shape index: {}]   ;;  %s590_s3 = inlined_call_operand.hbm [shape: f32[1,8,128], index: 3, kind: output, shape index: {}]  }
   0x1   :  { %9 = vsyncpa [#allocation6], 0 }
   0x2   :  { %10 = vsyncpa [#allocation4], 0  ;;  %s475_s12 = smov [#allocation5]   ;;  %s476_s14 = smov [#allocation2]  }
   0x3   :  { %s29_s13 = sshll.u32 %s475_s12, 4  ;;  %s16_s15 = sshll.u32 %s476_s14, 4  ;;  %s30_s13 = int_to_ptr.vmem [resolvable:$true] %s29_s13  ;;  %s502_s15 = int_to_ptr.vmem [resolvable:$true] %s16_s15 }
   0x4   :  { %s381_s18 = scalar_lea.hbm %s588_s1, 64 }
   0x5   :  { %p382_p0 = scmp.ne.s32.totalorder %s588_s1, %s381_s18  ;;  %p385_p1 = scmp.lt.u32.totalorder %s381_s18, %s588_s1 }
   0x7   :  { %p387_p2 = pnand %p385_p1, %p382_p0 }
   0x9   :  { %390 = shalt.err (!%p387_p2)
}
   0xa   :  { %s391_s23 = scalar_lea.vmem %s30_s13, 64  ;;  %p396_p4 = scmp.lt.s32.totalorder %s30_s13, %s30_s13 }
   0xb   :  { %p392_p3 = scmp.ne.s32.totalorder %s30_s13, %s391_s23  ;;  %p397_p5 = scmp.lt.s32.totalorder %s391_s23, %s391_s23 }
   0xd   :  { %p398_p6 = por %p397_p5, %p396_p4 }
   0xf   :  { %p399_p7 = pnand %p398_p6, %p392_p3 }
  0x11   :  { %402 = shalt.err (!%p399_p7)
}
  0x12   :  { %32 = dma.hbm_to_vmem [thread:$0]  %s588_s1, 64, %s30_s13, [#allocation6]  }
  0x13   :  { %s403_s28 = scalar_lea.hbm %s587_s0, 256 }
  0x14   :  { %p404_p8 = scmp.ne.s32.totalorder %s587_s0, %s403_s28  ;;  %p407_p9 = scmp.lt.u32.totalorder %s403_s28, %s587_s0 }
  0x16   :  { %p409_p10 = pnand %p407_p9, %p404_p8 }
  0x18   :  { %412 = shalt.err (!%p409_p10)
}
  0x19   :  { %s413_s6 = scalar_lea.vmem %s502_s15, 256  ;;  %p418_p12 = scmp.lt.s32.totalorder %s502_s15, %s502_s15 }
  0x1a   :  { %p414_p11 = scmp.ne.s32.totalorder %s502_s15, %s413_s6  ;;  %p419_p13 = scmp.lt.s32.totalorder %s413_s6, %s413_s6 }
  0x1c   :  { %p420_p0 = por %p419_p13, %p418_p12 }
  0x1e   :  { %p421_p1 = pnand %p420_p0, %p414_p11 }
  0x20   :  { %424 = shalt.err (!%p421_p1)
}
  0x21   :  { %s477_s1 = smov 128   ;;  %s478_s7 = smov 8  }
  0x22   :  { %22 = dma.hbm_to_vmem [thread:$0]  %s587_s0, 256, %s502_s15, [#allocation3], %s477_s1, %s477_s1, %s478_s7  }
  0x23   :  { %s479_s10 = smov [#allocation7]   ;;  %s425_s14 = scalar_lea.hbm %s589_s2, 256 }
  0x24   :  { %s38_s11 = sshll.u32 %s479_s10, 4  ;;  %p426_p2 = scmp.ne.s32.totalorder %s589_s2, %s425_s14  ;;  %s39_s11 = int_to_ptr.vmem [resolvable:$true] %s38_s11 }
  0x25   :  { %p429_p3 = scmp.lt.u32.totalorder %s425_s14, %s589_s2 }
  0x27   :  { %p431_p4 = pnand %p429_p3, %p426_p2 }
  0x29   :  { %434 = shalt.err (!%p431_p4)
}
  0x2a   :  { %s435_s20 = scalar_lea.vmem %s39_s11, 256  ;;  %p440_p6 = scmp.lt.s32.totalorder %s39_s11, %s39_s11 }
  0x2b   :  { %p436_p5 = scmp.ne.s32.totalorder %s39_s11, %s435_s20  ;;  %p441_p7 = scmp.lt.s32.totalorder %s435_s20, %s435_s20 }
  0x2d   :  { %p442_p8 = por %p441_p7, %p440_p6 }
  0x2f   :  { %p443_p9 = pnand %p442_p8, %p436_p5 }
  0x31   :  { %446 = shalt.err (!%p443_p9)
}
  0x32   :  { %44 = dma.hbm_to_vmem [thread:$0]  %s589_s2, 256, %s39_s11, [#allocation6], %s477_s1, %s477_s1, %s478_s7  }
  0x33   :  { %469 = dma.done.wait [#allocation3], 256  }
  0x34   :  { %470 = vsyncadd [#allocation3], 4294967040 }
  0x35   :  { %471 = dma.done.wait [#allocation6], 320  }
  0x36   :  { %472 = vsyncadd [#allocation6], 4294966976  ;;  %vm65_vm0 = vcmask 1043456   ;;  %v54_v0 = vld [vmem:[#allocation2] sm:$0xff]  ;;  %v55_v1 = vld [vmem:[#allocation2 + $0x8] sm:$0xff]  ;;  %v160_v52 = vlaneseq  ;;  %vm276_vm5 = vcmask 1041409  }
  0x37   :  { %v61_v2 = vcombine.high %v54_v0, %v54_v0  ;;  %v62_v3 = vcombine.high %v55_v1, %v55_v1  ;;  %v66_v4 = vsel %vm65_vm0, %v54_v0, -inf  ;;  %v80_v5 = vsel %vm65_vm0, %v55_v1, -inf  ;;  %s481_s22 = smov [#allocation8]  }
  0x38   :  { %v67_v6 = vrot.slane %v66_v4, 4  ;;  %v81_v7 = vrot.slane %v80_v5, 4  ;;  %v161_v61 = vshrl.u32 %v160_v52, 7  ;;  %vm282_vm6 = vcmask 1041408   ;;  %s333_s23 = sshll.u32 %s481_s22, 4  ;;  %s334_s23 = int_to_ptr.vmem [resolvable:$true] %s333_s23 }
  0x39   :  { %v73_v8 = vsel %vm65_vm0, %v61_v2, -inf  ;;  %v87_v9 = vsel %vm65_vm0, %v62_v3, -inf  ;;  %s447_s24 = scalar_lea.vmem %s334_s23, 128  ;;  %p452_p11 = scmp.lt.s32.totalorder %s334_s23, %s334_s23 }
  0x3a   :  { %v68_v10 = vmax.f32 %v66_v4, %v67_v6  ;;  %v74_v11 = vrot.slane %v73_v8, 4  ;;  %v82_v12 = vmax.f32 %v80_v5, %v81_v7  ;;  %v88_v13 = vrot.slane %v87_v9, 4  ;;  %p448_p10 = scmp.ne.s32.totalorder %s334_s23, %s447_s24  ;;  %p453_p12 = scmp.lt.s32.totalorder %s447_s24, %s447_s24 }
  0x3b   :  { %v172_v7 = vsub.s32 0, %v161_v61 }
  0x3c   :  { %v69_v14 = vrot.slane %v68_v10, 2  ;;  %v75_v15 = vmax.f32 %v73_v8, %v74_v11  ;;  %v83_v16 = vrot.slane %v82_v12, 2  ;;  %v89_v17 = vmax.f32 %v87_v9, %v88_v13  ;;  %p454_p13 = por %p453_p12, %p452_p11 }
  0x3e   :  { %v70_v18 = vmax.f32 %v68_v10, %v69_v14  ;;  %v76_v19 = vrot.slane %v75_v15, 2  ;;  %v84_v20 = vmax.f32 %v82_v12, %v83_v16  ;;  %v90_v21 = vrot.slane %v89_v17, 2  ;;  %p455_p0 = pnand %p454_p13, %p448_p10 }
  0x3f   :  { %v176_v10 = vsub.s32 1, %v161_v61 }
  0x40   :  { %v71_v22 = vrot.slane %v70_v18, 1  ;;  %v77_v23 = vmax.f32 %v75_v15, %v76_v19  ;;  %v85_v24 = vrot.slane %v84_v20, 1  ;;  %v91_v25 = vmax.f32 %v89_v17, %v90_v21 }
  0x41   :  { %v480_v17 = vmov 0.0  }
  0x42   :  { %v72_v26 = vmax.f32 %v70_v18, %v71_v22  ;;  %v78_v27 = vrot.slane %v77_v23, 1  ;;  %v86_v28 = vmax.f32 %v84_v20, %v85_v24  ;;  %v92_v29 = vrot.slane %v91_v25, 1 }
  0x44   :  { %v79_v30 = vmax.f32 %v77_v23, %v78_v27  ;;  %v93_v31 = vmax.f32 %v91_v25, %v92_v29 }
  0x46   :  { %v98_v32 = vcombine.low %v72_v26, %v79_v30  ;;  %v99_v33 = vcombine.low %v86_v28, %v93_v31 }
  0x48   :  { %v102_v34 = vsub.f32 %v54_v0, %v98_v32  ;;  %v103_v35 = vsub.f32 %v55_v1, %v99_v33  ;;  %v343_v0 = vld.sshfl [vmem:[#allocation5] sm:$0x33 pattern:$0x75316420] }
  0x49   :  { %v169_v9 = vcombine.high %v343_v0, %v343_v0  ;;  %v173_v12 = vrot.slane %v343_v0, %v172_v7  ;;  %v177_v13 = vrot.slane %v343_v0, %v176_v10 }
  0x4a   :  { %v104_v36 = vmul.f32 1.442695, %v102_v34  ;;  %v106_v37 = vmul.f32 1.442695, %v103_v35 }
  0x4b   :  { %v181_v14 = vrot.slane %v169_v9, %v172_v7  ;;  %v185_v15 = vrot.slane %v169_v9, %v176_v10  ;;  %vm186_vm1 = vcmp.eq.s32.totalorder %v161_v61, %v173_v12  ;;  %vm187_vm2 = vcmp.eq.s32.totalorder %v161_v61, %v177_v13  ;;  %v57_v7 = vld [vmem:[#allocation7 + $0x8] sm:$0xff] }
  0x4c   :  { %361 = vpow2.f32 %v104_v36  ;;  %v344_v18 = vsel %vm186_vm1, 1.0, %v480_v17  ;;  %v345_v19 = vsel %vm187_vm2, 1.0, %v480_v17 }
  0x4d   :  { %363 = vpow2.f32 %v106_v37  ;;  %vm188_vm3 = vcmp.eq.s32.totalorder %v161_v61, %v181_v14  ;;  %vm189_vm4 = vcmp.eq.s32.totalorder %v161_v61, %v185_v15  ;;  %v202_v26 = vcombine.low %v344_v18, %v345_v19 }
  0x4e   :  { %v346_v21 = vsel %vm188_vm3, 1.0, %v480_v17  ;;  %v347_v22 = vsel %vm189_vm4, 1.0, %v480_v17 }
  0x4f   :  { %v203_v28 = vcombine.low %v346_v21, %v347_v22 }
  0x56   :  { %v549_v38 = vpop.eup %361 }
  0x57   :  { %v551_v39 = vpop.eup %363  ;;  %v110_v40 = vcombine.high %v549_v38, %v549_v38  ;;  %v114_v41 = vsel %vm65_vm0, %v549_v38, 0.0 }
  0x58   :  { %v111_v42 = vcombine.high %v551_v39, %v551_v39  ;;  %v115_v43 = vrot.slane %v114_v41, 4  ;;  %v128_v44 = vsel %vm65_vm0, %v551_v39, 0.0 }
  0x59   :  { %v121_v45 = vsel %vm65_vm0, %v110_v40, 0.0  ;;  %v129_v46 = vrot.slane %v128_v44, 4 }
  0x5a   :  { %v116_v47 = vadd.f32 %v115_v43, %v114_v41  ;;  %v122_v48 = vrot.slane %v121_v45, 4  ;;  %v135_v49 = vsel %vm65_vm0, %v111_v42, 0.0 }
  0x5b   :  { %v130_v50 = vadd.f32 %v129_v46, %v128_v44  ;;  %v136_v51 = vrot.slane %v135_v49, 4 }
  0x5c   :  { %v117_v53 = vrot.slane %v116_v47, 2  ;;  %v123_v54 = vadd.f32 %v122_v48, %v121_v45 }
  0x5d   :  { %v131_v55 = vrot.slane %v130_v50, 2  ;;  %v137_v56 = vadd.f32 %v136_v51, %v135_v49 }
  0x5e   :  { %v118_v57 = vadd.f32 %v117_v53, %v116_v47  ;;  %v124_v58 = vrot.slane %v123_v54, 2 }
  0x5f   :  { %v132_v59 = vadd.f32 %v131_v55, %v130_v50  ;;  %v138_v60 = vrot.slane %v137_v56, 2 }
  0x60   :  { %v119_v62 = vrot.slane %v118_v57, 1  ;;  %v125_v63 = vadd.f32 %v124_v58, %v123_v54 }
  0x61   :  { %v133_v1 = vrot.slane %v132_v59, 1  ;;  %v139_v2 = vadd.f32 %v138_v60, %v137_v56 }
  0x62   :  { %v120_v3 = vadd.f32 %v119_v62, %v118_v57  ;;  %v126_v4 = vrot.slane %v125_v63, 1 }
  0x63   :  { %v134_v5 = vadd.f32 %v133_v1, %v132_v59  ;;  %v140_v6 = vrot.slane %v139_v2, 1 }
  0x64   :  { %v127_v8 = vadd.f32 %v126_v4, %v125_v63  ;;  %365 = vrcp.f32 %v120_v3  ;;  %v56_v3 = vld [vmem:[#allocation7] sm:$0xff] }
  0x65   :  { %v141_v11 = vadd.f32 %v140_v6, %v139_v2  ;;  %367 = vrcp.f32 %v134_v5 }
  0x66   :  { %369 = vrcp.f32 %v127_v8 }
  0x67   :  { %371 = vrcp.f32 %v141_v11 }
  0x6e   :  { %v366_v16 = vpop.eup %365 }
  0x6f   :  { %v368_v20 = vpop.eup %367 }
  0x70   :  { %v370_v23 = vpop.eup %369 }
  0x71   :  { %v372_v24 = vpop.eup %371  ;;  %v154_v25 = vcombine.low %v366_v16, %v370_v23 }
  0x72   :  { %v155_v27 = vcombine.low %v368_v20, %v372_v24 }
  0x73   :  { %v158_v29 = vmul.f32 %v549_v38, %v154_v25 }
  0x74   :  { %v159_v30 = vmul.f32 %v551_v39, %v155_v27 }
  0x75   :  { %v206_v31 = vmul.f32 %v202_v26, %v158_v29  ;;  %v295_v5 = vmul.f32 %v158_v29, %v56_v3 }
  0x76   :  { %v207_v32 = vmul.f32 %v203_v28, %v159_v30  ;;  %v296_v10 = vmul.f32 %v159_v30, %v57_v7 }
  0x77   :  { %v210_v33 = vcombine.high %v206_v31, %v206_v31  ;;  %v214_v34 = vsel %vm65_vm0, %v206_v31, 0.0  ;;  %v299_v6 = vcombine.high %v295_v5, %v295_v5  ;;  %v303_v11 = vsel %vm65_vm0, %v295_v5, 0.0 }
  0x78   :  { %v211_v35 = vcombine.high %v207_v32, %v207_v32  ;;  %v215_v36 = vrot.slane %v214_v34, 4  ;;  %v228_v37 = vsel %vm65_vm0, %v207_v32, 0.0  ;;  %v300_v21 = vcombine.high %v296_v10, %v296_v10 }
  0x79   :  { %v221_v40 = vsel %vm65_vm0, %v210_v33, 0.0  ;;  %v229_v41 = vrot.slane %v228_v37, 4  ;;  %v304_v12 = vsel %vm65_vm0, %v299_v6, 0.0  ;;  %v306_v22 = vsel %vm65_vm0, %v296_v10, 0.0 }
  0x7a   :  { %v216_v42 = vadd.f32 %v215_v36, %v214_v34  ;;  %v222_v43 = vrot.slane %v221_v40, 4  ;;  %v235_v44 = vsel %vm65_vm0, %v211_v35, 0.0  ;;  %v305_v20 = vadd.f32 %v304_v12, %v303_v11 }
  0x7b   :  { %v230_v45 = vadd.f32 %v229_v41, %v228_v37  ;;  %v236_v38 = vrot.slane %v235_v44, 4  ;;  %v308_v29 = vsel %vm65_vm0, %v300_v21, 0.0 }
  0x7c   :  { %v217_v46 = vrot.slane %v216_v42, 2  ;;  %v223_v39 = vadd.f32 %v222_v43, %v221_v40  ;;  %v307_v27 = vadd.f32 %v306_v22, %v305_v20 }
  0x7d   :  { %v231_v47 = vrot.slane %v230_v45, 2  ;;  %v237_v48 = vadd.f32 %v236_v38, %v235_v44 }
  0x7e   :  { %v218_v49 = vadd.f32 %v217_v46, %v216_v42  ;;  %v224_v50 = vrot.slane %v223_v39, 2  ;;  %v309_v31 = vadd.f32 %v308_v29, %v307_v27 }
  0x7f   :  { %v232_v51 = vadd.f32 %v231_v47, %v230_v45  ;;  %v238_v53 = vrot.slane %v237_v48, 2 }
  0x80   :  { %v219_v54 = vrot.slane %v218_v49, 1  ;;  %v225_v55 = vadd.f32 %v224_v50, %v223_v39  ;;  %v255_v39 = vand.u32 127, %v160_v52 }
  0x81   :  { %v233_v56 = vrot.slane %v232_v51, 1  ;;  %v239_v57 = vadd.f32 %v238_v53, %v237_v48 }
  0x82   :  { %v220_v58 = vadd.f32 %v219_v54, %v218_v49  ;;  %v226_v59 = vrot.slane %v225_v55, 1  ;;  %vm319_vm7 = vcmp.eq.s32.totalorder %v255_v39, 0  ;;  %vm322_vm8 = vcmp.eq.s32.totalorder %v255_v39, 1 }
  0x83   :  { %v234_v60 = vadd.f32 %v233_v56, %v232_v51  ;;  %v240_v61 = vrot.slane %v239_v57, 1 }
  0x84   :  { %v227_v62 = vadd.f32 %v226_v59, %v225_v55  ;;  %v242_v63 = vadd.f32 1e-15, %v220_v58 }
  0x85   :  { %v241_v0 = vadd.f32 %v240_v61, %v239_v57  ;;  %v244_v1 = vadd.f32 1e-15, %v234_v60 }
  0x86   :  { %v243_v2 = vadd.f32 1e-15, %v227_v62  ;;  %373 = vlog2.f32 %v242_v63 }
  0x87   :  { %v245_v4 = vadd.f32 1e-15, %v241_v0  ;;  %375 = vlog2.f32 %v244_v1 }
  0x88   :  { %377 = vlog2.f32 %v243_v2 }
  0x89   :  { %379 = vlog2.f32 %v245_v4 }
  0x90   :  { %v374_v8 = vpop.eup %373 }
  0x91   :  { %v376_v9 = vpop.eup %375  ;;  %v247_v14 = vmul.f32 0.6931472, %v374_v8 }
  0x92   :  { %v378_v13 = vpop.eup %377  ;;  %v251_v15 = vmul.f32 0.6931472, %v376_v9 }
  0x93   :  { %v380_v16 = vpop.eup %379  ;;  %v249_v17 = vmul.f32 0.6931472, %v378_v13 }
  0x94   :  { %v253_v18 = vmul.f32 0.6931472, %v380_v16  ;;  %v275_v19 = vrot.slane %v251_v15, 7 }
  0x96   :  { %v277_v23 = vsel %vm276_vm5, %v275_v19, %v247_v14  ;;  %v278_v24 = vrot.slane %v253_v18, 7 }
  0x97   :  { %v283_v25 = vsel %vm282_vm6, %v277_v23, 0.0 }
  0x98   :  { %v279_v26 = vsel %vm276_vm5, %v278_v24, %v249_v17 }
  0x99   :  { %v284_v28 = vsel %vm282_vm6, %v279_v26, 0.0 }
  0x9a   :  { %v285_v30 = vadd.f32 %v284_v28, %v283_v25 }
  0x9c   :  { %286 = vadd.xlane.f32.xlu0 %v285_v30 }
  0xa0   :  { %310 = vadd.xlane.f32.xlu0 %v309_v31 }
 0x129   :  { %v287_v32 = vpop.xlane.xlu0 %286 }
 0x12a   :  { %v288_v33 = vrot.slane %v287_v32, 4 }
 0x12c   :  { %v289_v34 = vadd.f32 %v288_v33, %v287_v32 }
 0x12d   :  { %v311_v35 = vpop.xlane.xlu0 %310 }
 0x12e   :  { %v290_v36 = vrot.slane %v289_v34, 2  ;;  %v312_v37 = vrot.slane %v311_v35, 4 }
 0x130   :  { %v313_v40 = vadd.f32 %v312_v37, %v311_v35  ;;  %v291_v41 = vadd.f32 %v290_v36, %v289_v34 }
 0x132   :  { %v314_v42 = vrot.slane %v313_v40, 2  ;;  %v292_v43 = vrot.slane %v291_v41, 1 }
 0x134   :  { %v315_v44 = vadd.f32 %v314_v42, %v313_v40  ;;  %v293_v45 = vadd.f32 %v292_v43, %v291_v41 }
 0x136   :  { %348 = vpush %v293_v45  ;;  %v316_v38 = vrot.slane %v315_v44, 1 }
 0x138   :  { %v317_v46 = vadd.f32 %v316_v38, %v315_v44 }
 0x13a   :  { %350 = vpush %v317_v46 }
 0x167   :  { %s349_s2 = spop %348 }
 0x168   :  { %v320_v47 = vstv %s349_s2 }
 0x169   :  { %v321_v49 = vsel %vm319_vm7, %v320_v47, 0.0 }
 0x16b   :  { %s351_s21 = spop %350 }
 0x16c   :  { %v323_v48 = vstv %s351_s21 }
 0x16d   :  { %v324_v50 = vsel %vm322_vm8, %v323_v48, 0.0 }
 0x16e   :  { %v325_v51 = vadd.f32 %v324_v50, %v321_v49 }
 0x170   :  { %326 = vst [vmem:[#allocation8] sm:$0xff] %v325_v51 }
 0x171   :  { %458 = shalt.err (!%p455_p0)
}
 0x172   :  { %s459_s27 = scalar_lea.hbm %s590_s3, 128 }
 0x173   :  { %p460_p1 = scmp.ne.s32.totalorder %s590_s3, %s459_s27  ;;  %p463_p2 = scmp.lt.u32.totalorder %s459_s27, %s590_s3 }
 0x175   :  { %p465_p3 = pnand %p463_p2, %p460_p1 }
 0x177   :  { %468 = shalt.err (!%p465_p3)
}
 0x178   :  { %336 = dma.vmem_to_hbm [thread:$0]  %s334_s23, 128, %s590_s3, [#allocation4]  }
 0x179   :  { %473 = dma.done.wait [#allocation4], 128  }
 0x17a   :  { %474 = vsyncadd [#allocation4], 4294967168 }
 0x17b   :  { %340 = vsyncpa [#allocation3], 1 }
 0x17c   :  { %341 = vsyncpa [#allocation6], 1 }
 0x17d   :  { %342 = vsyncpa [#allocation4], 1 }

</bundles_post_ra>
